<compile_context>
chip_gen: v7x
topology: tpu7x:2x2x1
jax: 0.10.0
libtpu: 0.0.40
codegen_flags: <defaults>
</compile_context>

<pallas_src>
import jax
import jax.numpy as jnp
from jax.experimental import pallas as pl
from jax.experimental.pallas import tpu as pltpu

EPS = 1e-5


def _num_groups(channels):
    groups = 32
    if channels <= 16:
        groups = 8
    elif channels <= 64:
        groups = 16
    while channels % groups != 0:
        groups = int(groups / 2)
    assert groups > 2
    return groups


def group_avg_matrix(channels, groups):
    """(C, C) matrix A with A[i, j] = 1/Cg if i, j are in the same group."""
    cg = channels // groups
    idx = jnp.arange(channels)
    same = (idx[:, None] // cg) == (idx[None, :] // cg)
    return same.astype(jnp.float32) / float(cg)


def pack_conv_weight(w):
    """PyTorch Conv1d weight (OC, IC, 3) -> (OC, 3*IC) so the k=3 conv becomes
    one matmul against the stacked [h(l-1); h(l); h(l+1)] activations."""
    return jnp.concatenate([w[:, :, 0], w[:, :, 1], w[:, :, 2]], axis=1)


def pack_params(raw):
    """raw = (G1, gamma1, beta1, w1, b1, G2, gamma2, beta2, w2, b2) in PyTorch
    layouts -> 5 kernel-side arrays (requires out_channels == channels)."""
    (G1, gamma1, beta1, w1, b1, G2, gamma2, beta2, w2, b2) = raw
    C = gamma1.shape[0]
    OC = w1.shape[0]
    assert OC == C, "packing assumes out_channels == channels (identity skip)"
    assert G1 == G2, "identity skip implies identical GroupNorm group counts"
    return (
        group_avg_matrix(C, G1),                                      # (C, C) shared by both GNs
        jnp.stack([gamma1, beta1, b1], axis=1).astype(jnp.float32),   # (C, 3)
        pack_conv_weight(w1).astype(jnp.float32),                     # (OC, 3C)
        jnp.stack([gamma2, beta2, b2], axis=1).astype(jnp.float32),   # (OC, 3)
        pack_conv_weight(w2).astype(jnp.float32),                     # (OC, 3OC)
    )


def _group_norm(h, A, gamma, beta):
    """GroupNorm (affine folded into scale/shift) over a (Bt, C, L) block.

    Stats reduce over L first (lane reduce), then the tiny per-batch (C, 2)
    stats are packed along lanes and group-averaged with ONE (C, C) @ (C, 2*Bt)
    matmul per call.
    """
    Bt, C, L = h.shape
    mean_c = jnp.mean(h, axis=-1, keepdims=True)          # (Bt, C, 1)
    ex2_c = jnp.mean(h * h, axis=-1, keepdims=True)       # (Bt, C, 1)
    stats = jnp.concatenate([mean_c, ex2_c], axis=-1)     # (Bt, C, 2)
    stats2d = jnp.concatenate([stats[b] for b in range(Bt)], axis=-1)   # (C, 2*Bt)
    gstats = jnp.dot(A, stats2d, preferred_element_type=jnp.float32)    # (C, 2*Bt)
    scales, shifts = [], []
    for b in range(Bt):   # tiny (C, 1) arithmetic only
        mean = gstats[:, 2 * b:2 * b + 1]
        # TODO(synk): single-pass E[x^2]-E[x]^2 variance (clamped at 0); switch to
        # centered two-pass variance if inputs with |mean| >> std need tighter accuracy.
        var = jnp.maximum(gstats[:, 2 * b + 1:2 * b + 2] - mean * mean, 0.0)
        scale = jax.lax.rsqrt(var + EPS) * gamma           # fold affine: one mul+add per element
        scales.append(scale)
        shifts.append(beta - mean * scale)
    scale = jnp.stack(scales, axis=0)                      # (Bt, C, 1)
    shift = jnp.stack(shifts, axis=0)                      # (Bt, C, 1)
    return h * scale + shift


def _conv3_batched(h, w, bias, left_mask, right_mask):
    """Conv1d, kernel=3, pad=1, batched across the block.

    h: (Bt, C, L) f32, w: (OC, 3C) (f32 or bf16), bias: (OC, 1) f32.
    Builds one lane-dense (3C, Bt*L) operand and does a single MXU matmul.
    Returns (OC, Bt*L) f32.
    """
    Bt, C, L = h.shape
    hm = h.astype(w.dtype)                 # single cast before building the shifted taps
    zero = jnp.zeros((), w.dtype)
    cols = []
    for b in range(Bt):                    # data placement only: roll (XLU) + masked select + lane concat
        hb = hm[b]                                                         # (C, L)
        hb_prev = jnp.where(left_mask, zero, pltpu.roll(hb, shift=1, axis=1))       # h[:, l-1]
        hb_next = jnp.where(right_mask, zero, pltpu.roll(hb, shift=L - 1, axis=1))  # h[:, l+1]
        cols.append(jnp.concatenate([hb_prev, hb, hb_next], axis=0))       # (3C, L)
    hs = jnp.concatenate(cols, axis=1)                                     # (3C, Bt*L)
    out = jnp.dot(w, hs, preferred_element_type=jnp.float32)               # (OC, Bt*L) f32
    return out + bias


def resblock_kernel(x_ref, A_ref, gbb1_ref, w1_ref, gbb2_ref, w2_ref, o_ref):
    Bt, C, L = x_ref.shape
    OC = o_ref.shape[1]

    # (1, L) boundary masks, built once per grid step (broadcast over C and Bt).
    lane = jax.lax.broadcasted_iota(jnp.int32, (1, L), 1)
    left_mask = lane == 0
    right_mask = lane == (L - 1)

    A = A_ref[...]
    g1, bt1, b1 = gbb1_ref[:, 0:1], gbb1_ref[:, 1:2], gbb1_ref[:, 2:3]
    g2, bt2, b2 = gbb2_ref[:, 0:1], gbb2_ref[:, 1:2], gbb2_ref[:, 2:3]
    w1 = w1_ref[...]
    w2 = w2_ref[...]

    x = x_ref[...].astype(jnp.float32)                                     # (Bt, C, L)

    # ---- in_layers: GroupNorm -> SiLU -> Conv1d(k=3) ----
    h = _group_norm(x, A, g1, bt1)
    h = jax.nn.silu(h)                                                     # sigmoid on EUP, mul on VPU
    h1 = _conv3_batched(h, w1, b1, left_mask, right_mask)                  # (OC, Bt*L) f32

    # ---- out_layers: GroupNorm -> SiLU -> Dropout(identity, eval) -> zero-init Conv1d(k=3) ----
    h2 = jnp.stack([h1[:, b * L:(b + 1) * L] for b in range(Bt)], axis=0)  # (Bt, OC, L)
    h2 = _group_norm(h2, A, g2, bt2)
    h2 = jax.nn.silu(h2)
    # TODO(synk): nn.Dropout is identity in eval mode; train-mode masking not implemented.
    y = _conv3_batched(h2, w2, b2, left_mask, right_mask)                  # (OC, Bt*L) f32

    # ---- residual (skip_connection = Identity since OC == C) ----
    y3 = jnp.stack([y[:, b * L:(b + 1) * L] for b in range(Bt)], axis=0)   # (Bt, OC, L)
    o_ref[...] = (x_ref[...].astype(jnp.float32) + y3).astype(o_ref.dtype)


def _pick_batch_block(B, C, L, *, max_bt=8, vmem_budget_bytes=40 * 1024 * 1024):
    """Batch elements per grid step: amortize the ~0.35us/step overhead, keep
    >= 2 grid steps when possible (v7x megacore), and keep the working set
    inside a conservative VMEM budget (sized for v7x's 64 MiB physical VMEM;
    v5e/v6e have 128 MiB and can raise the budget)."""
    # Rough f32-equivalent working set per batch element: double-buffered
    # input + output blocks plus h / shifted taps / hs / conv outputs / stacks.
    per_elem_bytes = (2 + 2 + 12) * C * L * 4
    cap = max(int(vmem_budget_bytes // max(per_elem_bytes, 1)), 1)
    if B <= 2:
        return 1
    bt = max(min(max_bt, cap, B // 2), 1)
    while B % bt:
        bt -= 1
    return max(bt, 1)


def _full_spec(a):
    nd = a.ndim
    return pl.BlockSpec(a.shape, lambda i, _nd=nd: (0,) * _nd)


def resblock_forward(x, params, *, use_bf16_matmul=True, batch_block=None,
                     vmem_limit_bytes=None):
    B, C, L = x.shape
    A, gbb1, w1p, gbb2, w2p = params
    OC = w1p.shape[0]
    assert OC == C, "kernel assumes out_channels == channels (identity skip)"
    assert w1p.shape == (OC, 3 * C) and w2p.shape == (OC, 3 * OC)
    assert A.shape == (C, C)

    if use_bf16_matmul:
        # bf16 is MXU-native on all generations; GN stats / SiLU / accumulation stay f32.
        w1p = w1p.astype(jnp.bfloat16)
        w2p = w2p.astype(jnp.bfloat16)

    bt = batch_block if batch_block is not None else _pick_batch_block(B, C, L)
    assert B % bt == 0

    return pl.pallas_call(
        resblock_kernel,
        out_shape=jax.ShapeDtypeStruct((B, OC, L), x.dtype),
        grid_spec=pltpu.PrefetchScalarGridSpec(
            num_scalar_prefetch=0,
            grid=(B // bt,),
            in_specs=[
                pl.BlockSpec((bt, C, L), lambda i: (i, 0, 0)),   # x
                _full_spec(A),
                _full_spec(gbb1), _full_spec(w1p),
                _full_spec(gbb2), _full_spec(w2p),
            ],
            out_specs=pl.BlockSpec((bt, OC, L), lambda i: (i, 0, 0)),
        ),
        compiler_params=pltpu.CompilerParams(
            dimension_semantics=("parallel",),
            vmem_limit_bytes=vmem_limit_bytes),
    )(x, A, gbb1, w1p, gbb2, w2p)


def reference(x, raw):
    """Pure-JAX reference of the ResBlock forward (PyTorch-layout params)."""
    (G1, gamma1, beta1, w1, b1, G2, gamma2, beta2, w2, b2) = raw

    def gn(h, G, gamma, beta):
        B, C, L = h.shape
        hg = h.reshape(B, G, C // G, L)
        mean = hg.mean(axis=(2, 3), keepdims=True)
        var = hg.var(axis=(2, 3), keepdims=True)
        hn = ((hg - mean) / jnp.sqrt(var + EPS)).reshape(B, C, L)
        return hn * gamma[None, :, None] + beta[None, :, None]

    def conv(h, w, b):  # w: (OC, IC, 3), PyTorch layout
        out = jax.lax.conv_general_dilated(
            h, w, window_strides=(1,), padding=[(1, 1)],
            dimension_numbers=('NCH', 'OIH', 'NCH'),
            precision=jax.lax.Precision.HIGHEST)
        return out + b[None, :, None]

    h = gn(x, G1, gamma1, beta1)
    h = jax.nn.silu(h)
    h = conv(h, w1, b1)
    h = gn(h, G2, gamma2, beta2)
    h = jax.nn.silu(h)
    h = conv(h, w2, b2)
    return x + h


if __name__ == "__main__":
    B, C, L = 2, 16, 128
    OC = C                              # out_channels defaults to channels
    G1 = _num_groups(C)                 # = 8 for C = 16
    G2 = _num_groups(OC)

    key = jax.random.PRNGKey(0)
    kx, kw1, kb1, kw2, kb2, kg1, kbt1, kg2, kbt2 = jax.random.split(key, 9)

    x = jax.random.normal(kx, (B, C, L), dtype=jnp.float32)

    # --- Test 1: module exactly as initialized (zero_module'd second conv), f32 MXU path ---
    gamma1 = jnp.ones((C,), jnp.float32)
    beta1 = jnp.zeros((C,), jnp.float32)
    w1 = 0.1 * jax.random.normal(kw1, (OC, C, 3), dtype=jnp.float32)
    b1 = 0.1 * jax.random.normal(kb1, (OC,), dtype=jnp.float32)
    gamma2 = jnp.ones((OC,), jnp.float32)
    beta2 = jnp.zeros((OC,), jnp.float32)
    w2 = jnp.zeros((OC, OC, 3), jnp.float32)
    b2 = jnp.zeros((OC,), jnp.float32)

    raw1 = (G1, gamma1, beta1, w1, b1, G2, gamma2, beta2, w2, b2)
    y1 = resblock_forward(x, pack_params(raw1), use_bf16_matmul=False)
    jax.block_until_ready(y1)
    y1_ref = reference(x, raw1)
    assert y1.shape == (B, OC, L)
    assert jnp.allclose(y1, y1_ref, rtol=1e-2, atol=1e-2), \
        float(jnp.abs(y1 - y1_ref).max())

    # --- Test 2: nonzero out_layers params + batched conv path (batch_block=2), f32 MXU ---
    gamma1b = 1.0 + 0.1 * jax.random.normal(kg1, (C,), dtype=jnp.float32)
    beta1b = 0.1 * jax.random.normal(kbt1, (C,), dtype=jnp.float32)
    gamma2b = 1.0 + 0.1 * jax.random.normal(kg2, (OC,), dtype=jnp.float32)
    beta2b = 0.1 * jax.random.normal(kbt2, (OC,), dtype=jnp.float32)
    w2b = 0.1 * jax.random.normal(kw2, (OC, OC, 3), dtype=jnp.float32)
    b2b = 0.1 * jax.random.normal(kb2, (OC,), dtype=jnp.float32)

    raw2 = (G1, gamma1b, beta1b, w1, b1, G2, gamma2b, beta2b, w2b, b2b)
    y2_ref = reference(x, raw2)
    y2 = resblock_forward(x, pack_params(raw2), use_bf16_matmul=False, batch_block=2)
    jax.block_until_ready(y2)
    assert jnp.allclose(y2, y2_ref, rtol=1e-2, atol=1e-2), \
        float(jnp.abs(y2 - y2_ref).max())

    # --- Test 3: default fast path (bf16 MXU operands, f32 accumulation / GN / SiLU) ---
    y3 = resblock_forward(x, pack_params(raw2))
    jax.block_until_ready(y3)
    assert jnp.allclose(y3, y2_ref, rtol=5e-2, atol=5e-2), \
        float(jnp.abs(y3 - y2_ref).max())

    print("KERNEL_OK")
</pallas_src>

<mosaic_0001>
module attributes {stable_mosaic.version = 11 : i64} {
  func.func @resblock_kernel(%arg0: i32, %arg1: memref<1x16x128xf32, #tpu.memory_space<vmem>>, %arg2: memref<16x16xf32, #tpu.memory_space<vmem>>, %arg3: memref<16x3xf32, #tpu.memory_space<vmem>>, %arg4: memref<16x48xf32, #tpu.memory_space<vmem>>, %arg5: memref<16x3xf32, #tpu.memory_space<vmem>>, %arg6: memref<16x48xf32, #tpu.memory_space<vmem>>, %arg7: memref<1x16x128xf32, #tpu.memory_space<vmem>>) attributes {dimension_semantics = [#tpu.dimension_semantics<parallel>], iteration_bounds = array<i64: 2>, scalar_prefetch = 0 : i64, scratch_operands = 0 : i64, tpu.core_type = #tpu.core_type<tc>, window_params = [{transform_indices = @transform_0, window_bounds = array<i64: 1, 16, 128>}, {pipeline_mode = #tpu.pipeline_mode<synchronous>, transform_indices = @transform_1, window_bounds = array<i64: 16, 16>}, {pipeline_mode = #tpu.pipeline_mode<synchronous>, transform_indices = @transform_2, window_bounds = array<i64: 16, 3>}, {pipeline_mode = #tpu.pipeline_mode<synchronous>, transform_indices = @transform_3, window_bounds = array<i64: 16, 48>}, {pipeline_mode = #tpu.pipeline_mode<synchronous>, transform_indices = @transform_4, window_bounds = array<i64: 16, 3>}, {pipeline_mode = #tpu.pipeline_mode<synchronous>, transform_indices = @transform_5, window_bounds = array<i64: 16, 48>}, {transform_indices = @transform_6, window_bounds = array<i64: 1, 16, 128>}]} {
    %0 = tpu.iota {dimensions = array<i32: 1>} : vector<1x128xi32>
    %c0_i32 = arith.constant 0 : i32
    %1 = vector.broadcast %c0_i32 : i32 to vector<1x128xi32>
    %2 = arith.cmpi eq, %0, %1 : vector<1x128xi32>
    %c127_i32 = arith.constant 127 : i32
    %3 = vector.broadcast %c127_i32 : i32 to vector<1x128xi32>
    %4 = arith.cmpi eq, %0, %3 : vector<1x128xi32>
    %c0 = arith.constant 0 : index
    %c0_0 = arith.constant 0 : index
    %5 = vector.load %arg2[%c0, %c0_0] : memref<16x16xf32, #tpu.memory_space<vmem>>, vector<16x16xf32>
    %c0_1 = arith.constant 0 : index
    %c0_2 = arith.constant 0 : index
    %6 = vector.load %arg3[%c0_1, %c0_2] : memref<16x3xf32, #tpu.memory_space<vmem>>, vector<16x1xf32>
    %c0_3 = arith.constant 0 : index
    %c1 = arith.constant 1 : index
    %7 = vector.load %arg3[%c0_3, %c1] : memref<16x3xf32, #tpu.memory_space<vmem>>, vector<16x1xf32>
    %c0_4 = arith.constant 0 : index
    %c2 = arith.constant 2 : index
    %8 = vector.load %arg3[%c0_4, %c2] : memref<16x3xf32, #tpu.memory_space<vmem>>, vector<16x1xf32>
    %c0_5 = arith.constant 0 : index
    %c0_6 = arith.constant 0 : index
    %9 = vector.load %arg5[%c0_5, %c0_6] : memref<16x3xf32, #tpu.memory_space<vmem>>, vector<16x1xf32>
    %c0_7 = arith.constant 0 : index
    %c1_8 = arith.constant 1 : index
    %10 = vector.load %arg5[%c0_7, %c1_8] : memref<16x3xf32, #tpu.memory_space<vmem>>, vector<16x1xf32>
    %c0_9 = arith.constant 0 : index
    %c2_10 = arith.constant 2 : index
    %11 = vector.load %arg5[%c0_9, %c2_10] : memref<16x3xf32, #tpu.memory_space<vmem>>, vector<16x1xf32>
    %c0_11 = arith.constant 0 : index
    %c0_12 = arith.constant 0 : index
    %12 = vector.load %arg4[%c0_11, %c0_12] : memref<16x48xf32, #tpu.memory_space<vmem>>, vector<16x48xf32>
    %c0_13 = arith.constant 0 : index
    %c0_14 = arith.constant 0 : index
    %13 = vector.load %arg6[%c0_13, %c0_14] : memref<16x48xf32, #tpu.memory_space<vmem>>, vector<16x48xf32>
    %c0_15 = arith.constant 0 : index
    %c0_16 = arith.constant 0 : index
    %c0_17 = arith.constant 0 : index
    %14 = vector.load %arg1[%c0_15, %c0_16, %c0_17] : memref<1x16x128xf32, #tpu.memory_space<vmem>>, vector<1x16x128xf32>
    %cst = arith.constant dense<0.000000e+00> : vector<1x16xf32>
    %15 = vector.multi_reduction <add>, %14, %cst [2] : vector<1x16x128xf32> to vector<1x16xf32>
    %16 = vector.shape_cast %15 : vector<1x16xf32> to vector<1x16x1xf32>
    %cst_18 = arith.constant 1.280000e+02 : f32
    %17 = vector.broadcast %cst_18 : f32 to vector<1x16x1xf32>
    %18 = arith.divf %16, %17 : vector<1x16x1xf32>
    %19 = arith.mulf %14, %14 : vector<1x16x128xf32>
    %cst_19 = arith.constant dense<0.000000e+00> : vector<1x16xf32>
    %20 = vector.multi_reduction <add>, %19, %cst_19 [2] : vector<1x16x128xf32> to vector<1x16xf32>
    %21 = vector.shape_cast %20 : vector<1x16xf32> to vector<1x16x1xf32>
    %cst_20 = arith.constant 1.280000e+02 : f32
    %22 = vector.broadcast %cst_20 : f32 to vector<1x16x1xf32>
    %23 = arith.divf %21, %22 : vector<1x16x1xf32>
    %24 = tpu.concatenate %18, %23 in 2 : vector<1x16x1xf32>, vector<1x16x1xf32> -> vector<1x16x2xf32>
    %25 = vector.shape_cast %24 : vector<1x16x2xf32> to vector<16x2xf32>
    %cst_21 = arith.constant dense<0.000000e+00> : vector<16x2xf32>
    %26 = tpu.matmul %5, %25, %cst_21 {dimension_numbers = #tpu.dot_dimension_numbers<[1], [0], [0], [1], [0, 0, 1, 1], [], []>} : vector<16x16xf32>, vector<16x2xf32>, vector<16x2xf32> -> vector<16x2xf32>
    %27 = vector.extract_strided_slice %26 {offsets = [0, 0], sizes = [16, 1], strides = [1, 1]} : vector<16x2xf32> to vector<16x1xf32>
    %28 = vector.extract_strided_slice %26 {offsets = [0, 1], sizes = [16, 1], strides = [1, 1]} : vector<16x2xf32> to vector<16x1xf32>
    %29 = arith.mulf %27, %27 : vector<16x1xf32>
    %30 = arith.subf %28, %29 : vector<16x1xf32>
    %cst_22 = arith.constant 0.000000e+00 : f32
    %31 = vector.broadcast %cst_22 : f32 to vector<16x1xf32>
    %32 = arith.maximumf %30, %31 : vector<16x1xf32>
    %cst_23 = arith.constant 9.99999974E-6 : f32
    %33 = vector.broadcast %cst_23 : f32 to vector<16x1xf32>
    %34 = arith.addf %32, %33 : vector<16x1xf32>
    %35 = math.rsqrt %34 : vector<16x1xf32>
    %36 = arith.mulf %35, %6 : vector<16x1xf32>
    %37 = arith.mulf %27, %36 : vector<16x1xf32>
    %38 = arith.subf %7, %37 : vector<16x1xf32>
    %39 = vector.shape_cast %36 : vector<16x1xf32> to vector<1x16x1xf32>
    %40 = vector.shape_cast %38 : vector<16x1xf32> to vector<1x16x1xf32>
    %41 = vector.broadcast %39 : vector<1x16x1xf32> to vector<1x16x128xf32>
    %42 = arith.mulf %14, %41 : vector<1x16x128xf32>
    %43 = vector.broadcast %40 : vector<1x16x1xf32> to vector<1x16x128xf32>
    %44 = arith.addf %42, %43 : vector<1x16x128xf32>
    %45 = arith.negf %44 : vector<1x16x128xf32>
    %46 = math.exp %45 : vector<1x16x128xf32>
    %cst_24 = arith.constant 1.000000e+00 : f32
    %47 = vector.broadcast %cst_24 : f32 to vector<1x16x128xf32>
    %48 = arith.addf %47, %46 : vector<1x16x128xf32>
    %49 = arith.divf %47, %48 : vector<1x16x128xf32>
    %50 = arith.mulf %44, %49 : vector<1x16x128xf32>
    %51 = vector.shape_cast %50 : vector<1x16x128xf32> to vector<16x128xf32>
    %c1_i32 = arith.constant 1 : i32
    %52 = tpu.dynamic_rotate %51 by %c1_i32 dim 1 : vector<16x128xf32>, i32 -> vector<16x128xf32>
    %cst_25 = arith.constant 0.000000e+00 : f32
    %53 = vector.shape_cast %2 : vector<1x128xi1> to vector<1x128xi1>
    %54 = vector.broadcast %53 : vector<1x128xi1> to vector<16x128xi1>
    %55 = vector.broadcast %cst_25 : f32 to vector<16x128xf32>
    %56 = arith.select %54, %55, %52 : vector<16x128xi1>, vector<16x128xf32>
    %c127_i32_26 = arith.constant 127 : i32
    %57 = tpu.dynamic_rotate %51 by %c127_i32_26 dim 1 : vector<16x128xf32>, i32 -> vector<16x128xf32>
    %cst_27 = arith.constant 0.000000e+00 : f32
    %58 = vector.shape_cast %4 : vector<1x128xi1> to vector<1x128xi1>
    %59 = vector.broadcast %58 : vector<1x128xi1> to vector<16x128xi1>
    %60 = vector.broadcast %cst_27 : f32 to vector<16x128xf32>
    %61 = arith.select %59, %60, %57 : vector<16x128xi1>, vector<16x128xf32>
    %62 = tpu.concatenate %56, %51, %61 in 0 : vector<16x128xf32>, vector<16x128xf32>, vector<16x128xf32> -> vector<48x128xf32>
    %cst_28 = arith.constant dense<0.000000e+00> : vector<16x128xf32>
    %63 = tpu.matmul %12, %62, %cst_28 {dimension_numbers = #tpu.dot_dimension_numbers<[1], [0], [0], [1], [0, 0, 1, 1], [], []>} : vector<16x48xf32>, vector<48x128xf32>, vector<16x128xf32> -> vector<16x128xf32>
    %64 = vector.broadcast %8 : vector<16x1xf32> to vector<16x128xf32>
    %65 = arith.addf %63, %64 : vector<16x128xf32>
    %66 = vector.shape_cast %65 : vector<16x128xf32> to vector<1x16x128xf32>
    %cst_29 = arith.constant dense<0.000000e+00> : vector<1x16xf32>
    %67 = vector.multi_reduction <add>, %66, %cst_29 [2] : vector<1x16x128xf32> to vector<1x16xf32>
    %68 = vector.shape_cast %67 : vector<1x16xf32> to vector<1x16x1xf32>
    %cst_30 = arith.constant 1.280000e+02 : f32
    %69 = vector.broadcast %cst_30 : f32 to vector<1x16x1xf32>
    %70 = arith.divf %68, %69 : vector<1x16x1xf32>
    %71 = arith.mulf %66, %66 : vector<1x16x128xf32>
    %cst_31 = arith.constant dense<0.000000e+00> : vector<1x16xf32>
    %72 = vector.multi_reduction <add>, %71, %cst_31 [2] : vector<1x16x128xf32> to vector<1x16xf32>
    %73 = vector.shape_cast %72 : vector<1x16xf32> to vector<1x16x1xf32>
    %cst_32 = arith.constant 1.280000e+02 : f32
    %74 = vector.broadcast %cst_32 : f32 to vector<1x16x1xf32>
    %75 = arith.divf %73, %74 : vector<1x16x1xf32>
    %76 = tpu.concatenate %70, %75 in 2 : vector<1x16x1xf32>, vector<1x16x1xf32> -> vector<1x16x2xf32>
    %77 = vector.shape_cast %76 : vector<1x16x2xf32> to vector<16x2xf32>
    %cst_33 = arith.constant dense<0.000000e+00> : vector<16x2xf32>
    %78 = tpu.matmul %5, %77, %cst_33 {dimension_numbers = #tpu.dot_dimension_numbers<[1], [0], [0], [1], [0, 0, 1, 1], [], []>} : vector<16x16xf32>, vector<16x2xf32>, vector<16x2xf32> -> vector<16x2xf32>
    %79 = vector.extract_strided_slice %78 {offsets = [0, 0], sizes = [16, 1], strides = [1, 1]} : vector<16x2xf32> to vector<16x1xf32>
    %80 = vector.extract_strided_slice %78 {offsets = [0, 1], sizes = [16, 1], strides = [1, 1]} : vector<16x2xf32> to vector<16x1xf32>
    %81 = arith.mulf %79, %79 : vector<16x1xf32>
    %82 = arith.subf %80, %81 : vector<16x1xf32>
    %cst_34 = arith.constant 0.000000e+00 : f32
    %83 = vector.broadcast %cst_34 : f32 to vector<16x1xf32>
    %84 = arith.maximumf %82, %83 : vector<16x1xf32>
    %cst_35 = arith.constant 9.99999974E-6 : f32
    %85 = vector.broadcast %cst_35 : f32 to vector<16x1xf32>
    %86 = arith.addf %84, %85 : vector<16x1xf32>
    %87 = math.rsqrt %86 : vector<16x1xf32>
    %88 = arith.mulf %87, %9 : vector<16x1xf32>
    %89 = arith.mulf %79, %88 : vector<16x1xf32>
    %90 = arith.subf %10, %89 : vector<16x1xf32>
    %91 = vector.shape_cast %88 : vector<16x1xf32> to vector<1x16x1xf32>
    %92 = vector.shape_cast %90 : vector<16x1xf32> to vector<1x16x1xf32>
    %93 = vector.broadcast %91 : vector<1x16x1xf32> to vector<1x16x128xf32>
    %94 = arith.mulf %66, %93 : vector<1x16x128xf32>
    %95 = vector.broadcast %92 : vector<1x16x1xf32> to vector<1x16x128xf32>
    %96 = arith.addf %94, %95 : vector<1x16x128xf32>
    %97 = arith.negf %96 : vector<1x16x128xf32>
    %98 = math.exp %97 : vector<1x16x128xf32>
    %cst_36 = arith.constant 1.000000e+00 : f32
    %99 = vector.broadcast %cst_36 : f32 to vector<1x16x128xf32>
    %100 = arith.addf %99, %98 : vector<1x16x128xf32>
    %101 = arith.divf %99, %100 : vector<1x16x128xf32>
    %102 = arith.mulf %96, %101 : vector<1x16x128xf32>
    %103 = vector.shape_cast %102 : vector<1x16x128xf32> to vector<16x128xf32>
    %c1_i32_37 = arith.constant 1 : i32
    %104 = tpu.dynamic_rotate %103 by %c1_i32_37 dim 1 : vector<16x128xf32>, i32 -> vector<16x128xf32>
    %cst_38 = arith.constant 0.000000e+00 : f32
    %105 = vector.shape_cast %2 : vector<1x128xi1> to vector<1x128xi1>
    %106 = vector.broadcast %105 : vector<1x128xi1> to vector<16x128xi1>
    %107 = vector.broadcast %cst_38 : f32 to vector<16x128xf32>
    %108 = arith.select %106, %107, %104 : vector<16x128xi1>, vector<16x128xf32>
    %c127_i32_39 = arith.constant 127 : i32
    %109 = tpu.dynamic_rotate %103 by %c127_i32_39 dim 1 : vector<16x128xf32>, i32 -> vector<16x128xf32>
    %cst_40 = arith.constant 0.000000e+00 : f32
    %110 = vector.shape_cast %4 : vector<1x128xi1> to vector<1x128xi1>
    %111 = vector.broadcast %110 : vector<1x128xi1> to vector<16x128xi1>
    %112 = vector.broadcast %cst_40 : f32 to vector<16x128xf32>
    %113 = arith.select %111, %112, %109 : vector<16x128xi1>, vector<16x128xf32>
    %114 = tpu.concatenate %108, %103, %113 in 0 : vector<16x128xf32>, vector<16x128xf32>, vector<16x128xf32> -> vector<48x128xf32>
    %cst_41 = arith.constant dense<0.000000e+00> : vector<16x128xf32>
    %115 = tpu.matmul %13, %114, %cst_41 {dimension_numbers = #tpu.dot_dimension_numbers<[1], [0], [0], [1], [0, 0, 1, 1], [], []>} : vector<16x48xf32>, vector<48x128xf32>, vector<16x128xf32> -> vector<16x128xf32>
    %116 = vector.broadcast %11 : vector<16x1xf32> to vector<16x128xf32>
    %117 = arith.addf %115, %116 : vector<16x128xf32>
    %118 = vector.shape_cast %117 : vector<16x128xf32> to vector<1x16x128xf32>
    %c0_42 = arith.constant 0 : index
    %c0_43 = arith.constant 0 : index
    %c0_44 = arith.constant 0 : index
    %119 = vector.load %arg1[%c0_42, %c0_43, %c0_44] : memref<1x16x128xf32, #tpu.memory_space<vmem>>, vector<1x16x128xf32>
    %120 = arith.addf %119, %118 : vector<1x16x128xf32>
    %c0_45 = arith.constant 0 : index
    %c0_46 = arith.constant 0 : index
    %c0_47 = arith.constant 0 : index
    %121 = vector.load %arg7[%c0_45, %c0_46, %c0_47] : memref<1x16x128xf32, #tpu.memory_space<vmem>>, vector<1x16x128xf32>
    tpu.vector_store %arg7[%c0_45, %c0_46, %c0_47], %120 {strides = array<i32>} : memref<1x16x128xf32, #tpu.memory_space<vmem>>, vector<1x16x128xf32>,
    return
  }
  func.func @transform_0(%arg0: i32) -> (i32, i32, i32) {
    %c0_i32 = arith.constant 0 : i32
    %c0_i32_0 = arith.constant 0 : i32
    %c0_i32_1 = arith.constant 0 : i32
    return %arg0, %c0_i32, %c0_i32_0 : i32, i32, i32
  }
  func.func @transform_1(%arg0: i32) -> (i32, i32) {
    %c0_i32 = arith.constant 0 : i32
    %c0_i32_0 = arith.constant 0 : i32
    %c0_i32_1 = arith.constant 0 : i32
    return %c0_i32, %c0_i32_0 : i32, i32
  }
  func.func @transform_2(%arg0: i32) -> (i32, i32) {
    %c0_i32 = arith.constant 0 : i32
    %c0_i32_0 = arith.constant 0 : i32
    %c0_i32_1 = arith.constant 0 : i32
    return %c0_i32, %c0_i32_0 : i32, i32
  }
  func.func @transform_3(%arg0: i32) -> (i32, i32) {
    %c0_i32 = arith.constant 0 : i32
    %c0_i32_0 = arith.constant 0 : i32
    %c0_i32_1 = arith.constant 0 : i32
    return %c0_i32, %c0_i32_0 : i32, i32
  }
  func.func @transform_4(%arg0: i32) -> (i32, i32) {
    %c0_i32 = arith.constant 0 : i32
    %c0_i32_0 = arith.constant 0 : i32
    %c0_i32_1 = arith.constant 0 : i32
    return %c0_i32, %c0_i32_0 : i32, i32
  }
  func.func @transform_5(%arg0: i32) -> (i32, i32) {
    %c0_i32 = arith.constant 0 : i32
    %c0_i32_0 = arith.constant 0 : i32
    %c0_i32_1 = arith.constant 0 : i32
    return %c0_i32, %c0_i32_0 : i32, i32
  }
  func.func @transform_6(%arg0: i32) -> (i32, i32, i32) {
    %c0_i32 = arith.constant 0 : i32
    %c0_i32_0 = arith.constant 0 : i32
    %c0_i32_1 = arith.constant 0 : i32
    return %arg0, %c0_i32, %c0_i32_0 : i32, i32, i32
  }
}

</mosaic_0001>

<bundles_post_ra>
// kernel: tpu_custom_call.1
= control target key start
LH: loop header
LB: loop body
LE: loop exit
PB: predicated region body
PF: predicated region fallthrough
CT: control target
= control target key end

     0   :  { %11 = vsyncpa [#allocation3], 0  ;;  %s1717_s0 = inlined_call_operand.vmem [shape: f32[2,16,128], index: 0, kind: input, shape index: {}]   ;;  %s1718_s1 = inlined_call_operand.hbm [shape: f32[16,16], index: 1, kind: input, shape index: {}]   ;;  %s1719_s2 = inlined_call_operand.vmem [shape: f32[16,3], index: 2, kind: input, shape index: {}]   ;;  %s1720_s3 = inlined_call_operand.vmem [shape: f32[16,48], index: 3, kind: input, shape index: {}]   ;;  %s1721_s4 = inlined_call_operand.vmem [shape: f32[16,3], index: 4, kind: input, shape index: {}]   ;;  %s1722_s5 = inlined_call_operand.hbm [shape: f32[16,48], index: 5, kind: input, shape index: {}]   ;;  %s1723_s6 = inlined_call_operand.hbm [shape: f32[2,16,128], index: 6, kind: output, shape index: {}]  }
   0x1   :  { %12 = vsyncpa [#allocation6], 0 }
   0x2   :  { %13 = vsyncpa [#allocation4], 0 }
   0x3   :  { %15 = vsyncpa [#allocation4 + $0x1], 0  ;;  %s1414_s21 = smov 0   ;;  %s1416_s22 = smov 0  }
   0x4   :  { %s1418_s23 = smov 0   ;;  %s1420_s24 = smov 0  }
   0x5 LB: > { %s1435_s25 = sadd.s32 4294967295, %s1366_s24   ;;  %s964_s26 = sadd.s32 4294967294, %s1366_s24   ;;  %s1366_s24 = sphi %s1420_s24, %s1745_s24   ;;  %s1362_s23 = sphi %s1418_s23, %s1744_s23   ;;  %s1358_s22 = sphi %s1416_s22, %s1743_s22   ;;  %s1354_s21 = sphi %s1414_s21, %s1742_s21  }
   0x6   : > { %s1439_s27 = sadd.s32 1, %s1366_s24   ;;  %s159_s28 = sadd.s32 1, %s1362_s23 }
   0x7   : > { %s156_s29 = ssub.s32 %s1366_s24, %s1439_s27  ;;  %p169_p0 = scmp.ne.s32.totalorder %s1362_s23, %s1358_s22 }
   0x8   : > { %p157_p1 = scmp.eq.s32.totalorder %s156_s29, 0  ;;  %p170_p2 = scmp.eq.s32.totalorder %s1435_s25, 1 }
   0x9   : > { %p175_p3 = scmp.ne.s32.totalorder %s1358_s22, %s1354_s21  ;;  %p176_p4 = scmp.eq.s32.totalorder %s964_s26, 1 }
   0xa   : > { %s1450_s30 = scalar_select %p157_p1, %s1362_s23, %s159_s28  }
   0xb   : > { %p1452_p5 = por %p170_p2, %p169_p0  ;;  %p1456_p6 = por %p176_p4, %p175_p3 }
   0xc   : > { %p965_p7 = scmp.ge.s32.totalorder %s1366_s24, 1  ;;  %p183_p8 = scmp.lt.s32.totalorder %s1366_s24, 3 }
   0xd   : > { %s1727_s7 = scalar_select %p1452_p5, 1, 0 }
   0xe   : > { %s1728_s8 = scalar_select %p1456_p6, 1, 0 }
   0xf   : > { %p1724_p9 = scmp.eq.s32.totalorder %s1435_s25, 0  ;;  %p1463_p10 = pnand %p965_p7, %p183_p8 }
  0x10   : > { %s1368_s10 = smov [#allocation2]   ;;  %s1369_s13 = smov [#allocation5]  }
  0x11   : > { %s1729_s9 = scalar_select %p1463_p10, 1, 0 }
  0x12   : > { %s195_s11 = sshll.u32 %s1368_s10, 4  ;;  %p1130_p11 = pneg %p1463_p10  ;;  %s196_s11 = int_to_ptr.vmem [resolvable:$true] %s195_s11 }
  0x13   : > { %s217_s14 = sshll.u32 %s1369_s13, 4  ;;  %s1240_s17 = scalar_lea.hbm %s1718_s1, 256  ;;  %s1475_s14 = int_to_ptr.vmem [resolvable:$true] %s217_s14 }
  0x14   : > { %p1471_p12 = pnand %p1724_p9, %p1130_p11  ;;  %p1241_p13 = scmp.ne.s32.totalorder %s1718_s1, %s1240_s17 }
  0x15   : > { %p1247_p3 = scmp.lt.u32.totalorder %s1240_s17, %s1718_s1 }
  0x16   : > { %p1242_p0 = pneg %p1471_p12 }
  0x18   : > { %p1243_p1 = pnand %p1242_p0, %p1241_p13 }
  0x1a   : > { %p1244_p2 = pneg %p1243_p1 }
  0x1c   : > { %p1249_p4 = pnand %p1247_p3, %p1244_p2 }
  0x1e   : > { %1252 = shalt.err (!%p1249_p4)
}
  0x1f   : > { %s1253_s28 = scalar_lea.vmem %s196_s11, 256  ;;  %p1261_p9 = scmp.lt.s32.totalorder %s196_s11, %s196_s11 }
  0x20   : > { %p1254_p7 = scmp.ne.s32.totalorder %s196_s11, %s1253_s28  ;;  %p1262_p6 = scmp.lt.s32.totalorder %s1253_s28, %s1253_s28 }
  0x22   : > { %p1256_p8 = pnand %p1254_p7, %p1242_p0  ;;  %p1263_p5 = por %p1262_p6, %p1261_p9 }
  0x24   : > { %p1257_p11 = pneg %p1256_p8 }
  0x26   : > { %p1264_p10 = pnand %p1263_p5, %p1257_p11 }
  0x28   : > { %1267 = shalt.err (!%p1264_p10)
}
  0x29   : > { %s1370_s29 = smov 128   ;;  %s1371_s10 = smov 8  }
  0x2a   : > { %1133 = dma.hbm_to_vmem [thread:$0]  (!%p1471_p12), %s1718_s1, 256, %s196_s11, [#allocation3], %s1370_s29, %s1370_s29, %s1371_s10  }
  0x2b   : > { %s1268_s18 = scalar_lea.hbm %s1722_s5, 256 }
  0x2c   : > { %p1269_p13 = scmp.ne.s32.totalorder %s1722_s5, %s1268_s18  ;;  %p1275_p9 = scmp.lt.u32.totalorder %s1268_s18, %s1722_s5 }
  0x2e   : > { %p1271_p5 = pnand %p1269_p13, %p1242_p0 }
  0x30   : > { %p1272_p6 = pneg %p1271_p5 }
  0x32   : > { %p1277_p10 = pnand %p1275_p9, %p1272_p6 }
  0x34   : > { %1280 = shalt.err (!%p1277_p10)
}
  0x35   : > { %s1281_s11 = scalar_lea.vmem %s1475_s14, 256  ;;  %p1289_p4 = scmp.lt.s32.totalorder %s1475_s14, %s1475_s14 }
  0x36   : > { %p1282_p1 = scmp.ne.s32.totalorder %s1475_s14, %s1281_s11  ;;  %p1290_p7 = scmp.lt.s32.totalorder %s1281_s11, %s1281_s11 }
  0x38   : > { %p1284_p2 = pnand %p1282_p1, %p1242_p0  ;;  %p1291_p8 = por %p1290_p7, %p1289_p4 }
  0x3a   : > { %p1285_p3 = pneg %p1284_p2 }
  0x3c   : > { %p1292_p11 = pnand %p1291_p8, %p1285_p3 }
  0x3e   : > { %1295 = shalt.err (!%p1292_p11)
}
  0x3f   : > { %1136 = dma.hbm_to_vmem [thread:$0]  (!%p1471_p12), %s1722_s5, 256, %s1475_s14, [#allocation6], %s1370_s29, %s1370_s29, %s1371_s10  }
  0x40   : > { %p1731_p13 = scmp.ne.s32.totalorder %s1729_s9, 0 }
  0x41   : > { %p1732_p5 = scmp.eq.s32.totalorder (!%p1731_p13), %s1435_s25, 0 }
  0x42   : > { %241 = sbr.rel (%p1731_p13) target bundleno = 2592 (0xa20), region = 44 }
  0x49   : > { %1341 = dma.done.wait (%p1732_p5), [#allocation3], 256   ;;  %p1733_p0 = pmov %p1732_p5 }
  0x4b   : > { %1343 = vsyncadd (%p1733_p0), [#allocation3], 4294967040  ;;  %p1734_p6 = pmov %p1733_p0 }
  0x4c   : > { %p1735_p9 = pmov %p1733_p0 }
  0x4d   : > { %1345 = dma.done.wait (%p1734_p6), [#allocation6], 256  }
  0x4e   : > { %1347 = vsyncadd (%p1735_p9), [#allocation6], 4294967040  ;;  %p275_p10 = scmp.lt.s32.totalorder %s1435_s25, 1  ;;  %v284_v4 = vld [vmem:[#allocation2] sm:$0xff]  ;;  %vm314_vm0 = vcmask 130048   ;;  %vm311_vm1 = vcmask 7168  }
  0x4f   : > { %1040 = vmatprep.mubr.msk.f32.mxu1 %vm314_vm0, %v284_v4  ;;  %1062 = vmatprep.mubr.msk.f32.mxu0 %vm314_vm0, %v284_v4  ;;  %v1553_v16 = vld [vmem:[#allocation2 + $0x8] sm:$0xff]  ;;  %s1372_s16 = smov 1   ;;  %v1562_v21 = vld [vmem:[%s1719_s2] sm:$0xff]  ;;  %v1373_v32 = vmov 1   ;;  %s1374_s26 = smov 127   ;;  %vm504_vm2 = vcmask 392192  }
  0x50   : > { %s276_s12 = scalar_select %p275_p10, %s1435_s25, 1  ;;  %v1569_v22 = vld [vmem:[%s1719_s2 + $0x8] sm:$0xff]  ;;  %1189 = vset.pattern.permute.xlu1 %v1373_v32  ;;  %1188 = vset.pattern.permute.xlu0 %v1373_v32  ;;  %v290_v4 = vld [vmem:[%s1720_s3] sm:$0xff] }
  0x51   : > { %s1009_s19 = sshll.u32 %s1435_s25, 8  ;;  %p1740_p1 = scmp.ne.s32.totalorder %s1727_s7, 0 }
  0x52   : > { %s1008_s14 = sshll.u32 %s276_s12, 4  ;;  %s1673_s28 = scalar_lea.hbm %s1723_s6, %s1009_s19 }
  0x53   : > { %s279_s10 = scalar_lea.vmem %s1717_s0, %s1008_s14  ;;  %s1376_s13 = smov [#allocation7]  }
  0x54   : > { %v1539_v0 = vld [vmem:[%s279_s10] sm:$0xff]  ;;  %v1541_v1 = vld [vmem:[%s279_s10 + $0x8] sm:$0xff]  ;;  %s272_s10 = sand.u32 1, %s1358_s22   ;;  %s1300_s15 = sshll.u32 %s1376_s13, 4  ;;  %s1301_s15 = int_to_ptr.vmem [resolvable:$false] %s1300_s15 }
  0x55   : > { %296 = vadd.xlane.f32.xlu0 %v1539_v0  ;;  %v303_v2 = vmul.f32 %v1539_v0, %v1539_v0  ;;  %v304_v3 = vmul.f32 %v1541_v1, %v1541_v1  ;;  %s1676_s25 = scalar_lea.sflag [#allocation4], %s272_s10  ;;  %s1302_s12 = scalar_lea.vmem %s1301_s15, 512 }
  0x57   : > { %305 = vadd.xlane.f32.xlu1 %v303_v2 }
  0x59   : > { %298 = vadd.xlane.f32.xlu0 %v1541_v1 }
  0x5b   : > { %307 = vadd.xlane.f32.xlu1 %v304_v3 }
  0xe2   : > { %v297_v5 = vpop.xlane.xlu0 %296 }
  0xe3   : > { %v301_v8 = vmul.f32 0.0078125, %v297_v5  ;;  %v1375_v5 = vmov 2  }
  0xe4   : > { %v306_v6 = vpop.xlane.xlu1 %305 }
  0xe5   : > { %v309_v9 = vmul.f32 0.0078125, %v306_v6  ;;  %v280_v6 = vlaneseq }
  0xe6   : > { %v299_v7 = vpop.xlane.xlu0 %298 }
  0xe7   : > { %v302_v10 = vmul.f32 0.0078125, %v299_v7  ;;  %v312_v13 = vsel %vm311_vm1, %v301_v8, %v309_v9  ;;  %v281_v7 = vand.u32 127, %v280_v6 }
  0xe8   : > { %v308_v11 = vpop.xlane.xlu1 %307 }
  0xe9   : > { %v310_v12 = vmul.f32 0.0078125, %v308_v11  ;;  %vm1010_vm3 = vcmp.ne.s32.totalorder %v281_v7, 0  ;;  %vm1011_vm5 = vcmp.ne.s32.totalorder %v281_v7, 127 }
  0xea   : > { %vm1591_vm4 = vmpackc.low %vm1010_vm3, %vm1010_vm3 }
  0xeb   : > { %v313_v14 = vsel %vm311_vm1, %v302_v10, %v310_v12  ;;  %vm1599_vm6 = vmpackc.low %vm1011_vm5, %vm1011_vm5 }
  0xec   : > { %v1080_v15 = vpack.c.bf16 %v313_v14, %v312_v13 }
  0xee   : > { %1081 = vmatprep.subr.bf16.mxu1 %v1080_v15 }
  0xef   : > { %1083 = vmatpush3.bf16.msra.mxu1 %v1080_v15 }
  0xf2   : > { %1041 = vmatmul.mubr.msk.f32.vlgmr.msra.gmra.mrb[0].mxu1 %vm314_vm0, %v1553_v16 }
  0xf3   : > { %1055 = vmatprep.mubr.msk.f32.mxu1 %vm504_vm2, %v290_v4 }
 0x1c5   : > { %v1042_v17 = vpop.f32.mrb[0].mxu1 }
 0x1c6   : > { %v397_v18 = vmul.f32 %v1042_v17, %v1042_v17  ;;  %v387_v19 = vpop.f32.mrb[1].mxu1 }
 0x1c7   : > { %v396_v20 = vmul.f32 %v387_v19, %v387_v19 }
 0x1c8   : > { %402 = vrot.lane.b32.xlu1 %v397_v18, %s1372_s16 }
 0x1c9   : > { %400 = vrot.lane.b32.xlu0 %v396_v20, %s1372_s16 }
 0x1cc   : > { %416 = vrot.lane.b32.xlu1 %v1562_v21, %s1372_s16 }
 0x1d0   : > { %418 = vrot.lane.b32.xlu1 %v1569_v22, %s1372_s16 }
 0x23a   : > { %v403_v23 = vpop.permute.xlu1 %402 }
 0x23b   : > { %v407_v24 = vsub.f32 %v1042_v17, %v403_v23  ;;  %v401_v25 = vpop.permute.xlu0 %400 }
 0x23c   : > { %v406_v26 = vsub.f32 %v387_v19, %v401_v25 }
 0x23d   : > { %v409_v27 = vmax.f32 %v407_v24, 0.0 }
 0x23e   : > { %v408_v28 = vmax.f32 %v406_v26, 0.0  ;;  %v417_v31 = vpop.permute.xlu1 %416 }
 0x23f   : > { %v411_v29 = vadd.f32 1e-05, %v409_v27 }
 0x240   : > { %v410_v30 = vadd.f32 1e-05, %v408_v28 }
 0x241   : > { %1216 = vrsqrt.f32 %v411_v29 }
 0x242   : > { %1218 = vrsqrt.f32 %v410_v30  ;;  %v419_v33 = vpop.permute.xlu1 %418 }
 0x24b   : > { %v1217_v34 = vpop.eup %1216 }
 0x24c   : > { %v1219_v35 = vpop.eup %1218  ;;  %v423_v36 = vmul.f32 %v1217_v34, %v419_v33 }
 0x24d   : > { %v422_v37 = vmul.f32 %v1219_v35, %v417_v31 }
 0x24e   : > { %428 = vrot.lane.b32.xlu1 %v423_v36, %s1374_s26 }
 0x24f   : > { %426 = vrot.lane.b32.xlu0 %v422_v37, %s1374_s26 }
 0x2c0   : > { %v429_v38 = vpop.permute.xlu1 %428 }
 0x2c1   : > { %v433_v39 = vmul.f32 %v1042_v17, %v429_v38  ;;  %v427_v40 = vpop.permute.xlu0 %426 }
 0x2c2   : > { %v432_v41 = vmul.f32 %v427_v40, %v387_v19  ;;  %v291_v19 = vld [vmem:[%s1720_s3 + $0x8] sm:$0xff] }
 0x2c3   : > { %438 = vrot.lane.b32.xlu1 %v433_v39, %s1372_s16 }
 0x2c4   : > { %436 = vrot.lane.b32.xlu0 %v432_v41, %s1372_s16 }
 0x2c7   : > { %449 = vperm.xlu1 %1189, %v423_v36  }
 0x2c8   : > { %445 = vperm.xlu0 %1188, %v422_v37  }
 0x335   : > { %v439_v42 = vpop.permute.xlu1 %438 }
 0x336   : > { %v443_v43 = vsub.f32 %v1569_v22, %v439_v42  ;;  %v437_v44 = vpop.permute.xlu0 %436 }
 0x337   : > { %v442_v45 = vsub.f32 %v1562_v21, %v437_v44 }
 0x338   : > { %461 = vperm.xlu0 %1188, %v443_v43   ;;  %v1630_v43 = vld [vmem:[%s1721_s4] sm:$0xff] }
 0x339   : > { %456 = vperm.xlu1 %1189, %v442_v45  }
 0x33c   : > { %1201 = vset.pattern.permute.xlu0 %v1375_v5 }
 0x33d   : > { %1200 = vset.pattern.permute.xlu1 %v1375_v5 }
 0x346   : > { %v450_v46 = vpop.permute.xlu1 %449 }
 0x347   : > { %v446_v47 = vpop.permute.xlu0 %445  ;;  %v453_v48 = vmul.f32 %v450_v46, %v1541_v1 }
 0x348   : > { %v452_v49 = vmul.f32 %v446_v47, %v1539_v0 }
 0x3b7   : > { %v462_v50 = vpop.permute.xlu0 %461 }
 0x3b8   : > { %v465_v51 = vadd.f32 %v462_v50, %v453_v48  ;;  %v457_v52 = vpop.permute.xlu1 %456 }
 0x3b9   : > { %v464_v53 = vadd.f32 %v457_v52, %v452_v49 }
 0x3ba   : > { %v978_v54 = vmul.f32 -1.442695, %v465_v51 }
 0x3bb   : > { %v977_v55 = vmul.f32 -1.442695, %v464_v53 }
 0x3bc   : > { %1220 = vpow2.f32 %v978_v54 }
 0x3bd   : > { %1222 = vpow2.f32 %v977_v55 }
 0x3c6   : > { %v1221_v56 = vpop.eup %1220 }
 0x3c7   : > { %v1223_v57 = vpop.eup %1222  ;;  %v473_v58 = vadd.f32 1.0, %v1221_v56 }
 0x3c8   : > { %v472_v59 = vadd.f32 1.0, %v1223_v57 }
 0x3c9   : > { %1224 = vrcp.f32 %v473_v58 }
 0x3ca   : > { %1226 = vrcp.f32 %v472_v59 }
 0x3d3   : > { %v1225_v60 = vpop.eup %1224 }
 0x3d4   : > { %v1227_v61 = vpop.eup %1226  ;;  %v479_v62 = vmul.f32 %v1225_v60, %v465_v51 }
 0x3d5   : > { %v478_v63 = vmul.f32 %v1227_v61, %v464_v53 }
 0x3d7   : > { %v1195_v2 = vpack.i.bf16 %v479_v62, %v478_v63  ;;  %v1090_v3 = vpack.c.bf16 %v479_v62, %v478_v63 }
 0x3d9   : > { %1196 = vrot.lane.b32.xlu0 %v1195_v2, %s1374_s26  ;;  %1191 = vrot.lane.b32.xlu1 %v1195_v2, %s1372_s16 }
 0x3dd   : > { %501 = vperm.xlu0 %1201, %v1569_v22   ;;  %497 = vperm.xlu1 %1200, %v1562_v21  }
 0x3e1   : > { %1203 = vset.pattern.permute.xlu1 %v1373_v32  ;;  %1202 = vset.pattern.permute.xlu0 %v1373_v32 }
 0x44b   : > { %v1192_v8 = vpop.permute.xlu1 %1191  ;;  %v1197_v11 = vpop.permute.xlu0 %1196 }
 0x44c   : > { %v1194_v9 = vunpack.i.h.bf16 %v1192_v8  ;;  %v1193_v10 = vunpack.i.l.bf16 %v1192_v8  ;;  %v1199_v14 = vunpack.i.h.bf16 %v1197_v11  ;;  %v1198_v15 = vunpack.i.l.bf16 %v1197_v11 }
 0x44e   : > { %v1084_v13 = vpack.c.bf16 %v1194_v9, %v1193_v10  ;;  %v1094_v18 = vpack.c.bf16 %v1199_v14, %v1198_v15 }
 0x450   : > { %1086 = vmatprep.subr.msk.bf16.mxu1 %vm1591_vm4, %v1084_v13 }
 0x451   : > { %1089 = vmatpush3.bf16.msk.msra.mxu1 %vm1591_vm4, %v1084_v13 }
 0x452   : > { %1091 = vmatprep.subr.bf16.mxu1 %v1090_v3 }
 0x455   : > { %1093 = vmatpush3.bf16.msra.mxu1 %v1090_v3 }
 0x456   : > { %1096 = vmatprep.subr.msk.bf16.mxu1 %vm1599_vm6, %v1094_v18 }
 0x459   : > { %1099 = vmatpush3.bf16.msk.msra.mxu1 %vm1599_vm6, %v1094_v18 }
 0x45c   : > { %1056 = vmatmul.mubr.msk.f32.vlgmr.msra.gmra.mrb[2].mxu1 %vm504_vm2, %v291_v19  ;;  %v502_v20 = vpop.permute.xlu0 %501  ;;  %v498_v21 = vpop.permute.xlu1 %497 }
 0x52f   : > { %v1057_v22 = vpop.f32.mrb[2].mxu1 }
 0x530   : > { %v1611_v23 = vadd.f32 %v1057_v22, %v502_v20  ;;  %v577_v24 = vpop.f32.mrb[3].mxu1 }
 0x531   : > { %v1613_v25 = vadd.f32 %v577_v24, %v498_v21 }
 0x532   : > { %588 = vadd.xlane.f32.xlu0 %v1611_v23  ;;  %v593_v27 = vmul.f32 %v1611_v23, %v1611_v23 }
 0x533   : > { %586 = vadd.xlane.f32.xlu1 %v1613_v25  ;;  %v592_v26 = vmul.f32 %v1613_v25, %v1613_v25 }
 0x536   : > { %594 = vadd.xlane.f32.xlu0 %v592_v26 }
 0x537   : > { %596 = vadd.xlane.f32.xlu1 %v593_v27  ;;  %v292_v27 = vld [vmem:[#allocation5] sm:$0xff] }
 0x5bf   : > { %v589_v28 = vpop.xlane.xlu0 %588 }
 0x5c0   : > { %v587_v29 = vpop.xlane.xlu1 %586  ;;  %v591_v34 = vmul.f32 0.0078125, %v589_v28 }
 0x5c1   : > { %v590_v31 = vmul.f32 0.0078125, %v587_v29 }
 0x5c3   : > { %v595_v30 = vpop.xlane.xlu0 %594 }
 0x5c4   : > { %v598_v32 = vmul.f32 0.0078125, %v595_v30  ;;  %v597_v33 = vpop.xlane.xlu1 %596 }
 0x5c5   : > { %v599_v35 = vmul.f32 0.0078125, %v597_v33 }
 0x5c6   : > { %v600_v36 = vsel %vm311_vm1, %v590_v31, %v598_v32 }
 0x5c7   : > { %v601_v37 = vsel %vm311_vm1, %v591_v34, %v599_v35 }
 0x5c8   : > { %v1100_v38 = vpack.c.bf16 %v601_v37, %v600_v36  ;;  %v293_v36 = vld [vmem:[#allocation5 + $0x8] sm:$0xff] }
 0x5ca   : > { %1101 = vmatprep.subr.bf16.mxu0 %v1100_v38 }
 0x5cb   : > { %1103 = vmatpush3.bf16.msra.mxu0 %v1100_v38 }
 0x5ce   : > { %1063 = vmatmul.mubr.msk.f32.vlgmr.msra.gmra.mrb[0].mxu0 %vm314_vm0, %v1553_v16  ;;  %v1637_v16 = vld [vmem:[%s1721_s4 + $0x8] sm:$0xff] }
 0x5cf   : > { %1077 = vmatprep.mubr.msk.f32.mxu0 %vm504_vm2, %v292_v27 }
 0x6a1   : > { %v1064_v39 = vpop.f32.mrb[0].mxu0 }
 0x6a2   : > { %v678_v40 = vmul.f32 %v1064_v39, %v1064_v39  ;;  %v668_v41 = vpop.f32.mrb[1].mxu0 }
 0x6a3   : > { %v677_v42 = vmul.f32 %v668_v41, %v668_v41 }
 0x6a4   : > { %683 = vrot.lane.b32.xlu1 %v678_v40, %s1372_s16 }
 0x6a5   : > { %681 = vrot.lane.b32.xlu0 %v677_v42, %s1372_s16 }
 0x6a8   : > { %697 = vrot.lane.b32.xlu1 %v1630_v43, %s1372_s16 }
 0x6ac   : > { %699 = vrot.lane.b32.xlu1 %v1637_v16, %s1372_s16 }
 0x716   : > { %v684_v44 = vpop.permute.xlu1 %683 }
 0x717   : > { %v688_v45 = vsub.f32 %v1064_v39, %v684_v44  ;;  %v682_v46 = vpop.permute.xlu0 %681 }
 0x718   : > { %v687_v47 = vsub.f32 %v668_v41, %v682_v46 }
 0x719   : > { %v690_v48 = vmax.f32 %v688_v45, 0.0 }
 0x71a   : > { %v689_v49 = vmax.f32 %v687_v47, 0.0  ;;  %v698_v52 = vpop.permute.xlu1 %697 }
 0x71b   : > { %v692_v50 = vadd.f32 1e-05, %v690_v48 }
 0x71c   : > { %v691_v51 = vadd.f32 1e-05, %v689_v49 }
 0x71d   : > { %1228 = vrsqrt.f32 %v692_v50 }
 0x71e   : > { %1230 = vrsqrt.f32 %v691_v51  ;;  %v700_v53 = vpop.permute.xlu1 %699 }
 0x727   : > { %v1229_v54 = vpop.eup %1228 }
 0x728   : > { %v1231_v55 = vpop.eup %1230  ;;  %v704_v56 = vmul.f32 %v1229_v54, %v700_v53 }
 0x729   : > { %v703_v57 = vmul.f32 %v1231_v55, %v698_v52 }
 0x72a   : > { %709 = vrot.lane.b32.xlu1 %v704_v56, %s1374_s26 }
 0x72b   : > { %707 = vrot.lane.b32.xlu0 %v703_v57, %s1374_s26 }
 0x79c   : > { %v710_v58 = vpop.permute.xlu1 %709 }
 0x79d   : > { %v714_v59 = vmul.f32 %v1064_v39, %v710_v58  ;;  %v708_v60 = vpop.permute.xlu0 %707 }
 0x79e   : > { %v713_v61 = vmul.f32 %v708_v60, %v668_v41 }
 0x79f   : > { %719 = vrot.lane.b32.xlu1 %v714_v59, %s1372_s16 }
 0x7a0   : > { %717 = vrot.lane.b32.xlu0 %v713_v61, %s1372_s16 }
 0x7a3   : > { %730 = vperm.xlu1 %1203, %v704_v56  }
 0x7a4   : > { %726 = vperm.xlu0 %1202, %v703_v57  }
 0x811   : > { %v720_v62 = vpop.permute.xlu1 %719 }
 0x812   : > { %v724_v63 = vsub.f32 %v1637_v16, %v720_v62  ;;  %v718_v2 = vpop.permute.xlu0 %717 }
 0x813   : > { %v723_v3 = vsub.f32 %v1630_v43, %v718_v2 }
 0x814   : > { %742 = vperm.xlu0 %1202, %v724_v63  }
 0x815   : > { %737 = vperm.xlu1 %1203, %v723_v3  }
 0x818   : > { %1215 = vset.pattern.permute.xlu0 %v1375_v5 }
 0x819   : > { %1214 = vset.pattern.permute.xlu1 %v1375_v5 }
 0x822   : > { %v731_v4 = vpop.permute.xlu1 %730 }
 0x823   : > { %v727_v6 = vpop.permute.xlu0 %726  ;;  %v734_v7 = vmul.f32 %v731_v4, %v1611_v23 }
 0x824   : > { %v733_v8 = vmul.f32 %v727_v6, %v1613_v25 }
 0x893   : > { %v743_v9 = vpop.permute.xlu0 %742 }
 0x894   : > { %v746_v10 = vadd.f32 %v743_v9, %v734_v7  ;;  %v738_v11 = vpop.permute.xlu1 %737 }
 0x895   : > { %v745_v13 = vadd.f32 %v738_v11, %v733_v8 }
 0x896   : > { %v992_v14 = vmul.f32 -1.442695, %v746_v10 }
 0x897   : > { %v991_v15 = vmul.f32 -1.442695, %v745_v13 }
 0x898   : > { %1232 = vpow2.f32 %v992_v14 }
 0x899   : > { %1234 = vpow2.f32 %v991_v15 }
 0x8a2   : > { %v1233_v18 = vpop.eup %1232 }
 0x8a3   : > { %v1235_v19 = vpop.eup %1234  ;;  %v754_v20 = vadd.f32 1.0, %v1233_v18 }
 0x8a4   : > { %v753_v21 = vadd.f32 1.0, %v1235_v19 }
 0x8a5   : > { %1236 = vrcp.f32 %v754_v20 }
 0x8a6   : > { %1238 = vrcp.f32 %v753_v21 }
 0x8af   : > { %v1237_v5 = vpop.eup %1236 }
 0x8b0   : > { %v1239_v22 = vpop.eup %1238  ;;  %v760_v24 = vmul.f32 %v1237_v5, %v746_v10 }
 0x8b1   : > { %v759_v23 = vmul.f32 %v1239_v22, %v745_v13 }
 0x8b3   : > { %v1209_v26 = vpack.i.bf16 %v760_v24, %v759_v23  ;;  %v1110_v25 = vpack.c.bf16 %v760_v24, %v759_v23 }
 0x8b5   : > { %1210 = vrot.lane.b32.xlu0 %v1209_v26, %s1374_s26  ;;  %1205 = vrot.lane.b32.xlu1 %v1209_v26, %s1372_s16  ;;  %s972_s16 = sshll.u32 %s272_s10, 4 }
 0x8b6   : > { %s274_s17 = scalar_lea.vmem [#allocation7], %s972_s16 }
 0x8b7   : > { %s880_s18 = sshll.u32 %s274_s17, 4  ;;  %s1668_s18 = int_to_ptr.vmem [resolvable:$true] %s880_s18 }
 0x8b8   : > { %s1296_s11 = scalar_lea.vmem %s1668_s18, 256  ;;  %p1303_p4 = scmp.lt.s32.totalorder %s1668_s18, %s1301_s15 }
 0x8b9   : > { %778 = vperm.xlu0 %1215, %v1637_v16   ;;  %774 = vperm.xlu1 %1214, %v1630_v43   ;;  %p1297_p12 = scmp.ne.s32.totalorder %s1668_s18, %s1296_s11  ;;  %p1304_p7 = scmp.lt.s32.totalorder %s1302_s12, %s1296_s11 }
 0x8bb   : > { %p1298_p2 = pnand %p1297_p12, %p1740_p1  ;;  %p1305_p8 = por %p1304_p7, %p1303_p4 }
 0x8bd   : > { %p1299_p3 = pneg %p1298_p2 }
 0x8bf   : > { %p1306_p11 = pnand %p1305_p8, %p1299_p3 }
 0x927   : > { %v1206_v28 = vpop.permute.xlu1 %1205  ;;  %v1211_v31 = vpop.permute.xlu0 %1210 }
 0x928   : > { %v1208_v29 = vunpack.i.h.bf16 %v1206_v28  ;;  %v1207_v30 = vunpack.i.l.bf16 %v1206_v28  ;;  %v1213_v33 = vunpack.i.h.bf16 %v1211_v31  ;;  %v1212_v34 = vunpack.i.l.bf16 %v1211_v31 }
 0x92a   : > { %v1104_v32 = vpack.c.bf16 %v1208_v29, %v1207_v30  ;;  %v1114_v35 = vpack.c.bf16 %v1213_v33, %v1212_v34 }
 0x92c   : > { %1106 = vmatprep.subr.msk.bf16.mxu0 %vm1591_vm4, %v1104_v32 }
 0x92d   : > { %1109 = vmatpush3.bf16.msk.msra.mxu0 %vm1591_vm4, %v1104_v32 }
 0x92e   : > { %1111 = vmatprep.subr.bf16.mxu0 %v1110_v25 }
 0x931   : > { %1113 = vmatpush3.bf16.msra.mxu0 %v1110_v25 }
 0x932   : > { %1116 = vmatprep.subr.msk.bf16.mxu0 %vm1599_vm6, %v1114_v35 }
 0x935   : > { %1119 = vmatpush3.bf16.msk.msra.mxu0 %vm1599_vm6, %v1114_v35 }
 0x938   : > { %1078 = vmatmul.mubr.msk.f32.vlgmr.msra.gmra.mrb[2].mxu0 %vm504_vm2, %v293_v36  ;;  %v779_v37 = vpop.permute.xlu0 %778  ;;  %v775_v38 = vpop.permute.xlu1 %774 }
 0xa0b   : > { %v1079_v39 = vpop.f32.mrb[2].mxu0 }
 0xa0c   : > { %v859_v12 = vadd.f32 %v1079_v39, %v779_v37  ;;  %v853_v40 = vpop.f32.mrb[3].mxu0 }
 0xa0d   : > { %v854_v41 = vadd.f32 %v853_v40, %v775_v38 }
 0xa0e   : > { %v863_v42 = vadd.f32 %v859_v12, %v1541_v1 }
 0xa0f   : > { %v862_v17 = vadd.f32 %v854_v41, %v1539_v0 }
 0xa10   : > { %865 = vst [vmem:[%s274_s17 + $0x8] sm:$0xff] %v863_v42 }
 0xa11   : > { %864 = vst [vmem:[%s274_s17] sm:$0xff] %v862_v17 }
 0xa12   : > { %1309 = shalt.err (!%p1306_p11)
}
 0xa13   : > { %s1310_s14 = scalar_lea.hbm %s1673_s28, 256  ;;  %s1314_s10 = scalar_lea.hbm %s1723_s6, 512 }
 0xa14   : > { %p1311_p13 = scmp.ne.s32.totalorder %s1673_s28, %s1310_s14  ;;  %p1315_p6 = scmp.lt.u32.totalorder %s1673_s28, %s1723_s6 }
 0xa15   : > { %p1316_p9 = scmp.lt.u32.totalorder %s1314_s10, %s1310_s14  ;;  %p1318_p12 = scmp.lt.u32.totalorder %s1310_s14, %s1673_s28 }
 0xa16   : > { %p1312_p5 = pnand %p1311_p13, %p1740_p1 }
 0xa17   : > { %p1317_p10 = por %p1316_p9, %p1315_p6 }
 0xa18   : > { %p1313_p0 = pneg %p1312_p5 }
 0xa19   : > { %p1319_p2 = por %p1318_p12, %p1317_p10 }
 0xa1b   : > { %p1320_p3 = pnand %p1319_p2, %p1313_p0 }
 0xa1d   : > { %1323 = shalt.err (!%p1320_p3)
}
 0xa1e   : > { %s1377_s19 = smov 128   ;;  %s1378_s20 = smov 8  }
 0xa1f   : > { %1128 = dma.vmem_to_hbm [thread:$0]  (%p1740_p1), %s1668_s18, 256, %s1673_s28, %s1676_s25, %s1377_s19, %s1377_s19, %s1378_s20  }
 0xa20 PF: > { %p1145_p4 = scmp.ge.s32.totalorder %s1366_s24, 2  ;;  %s895_s26 = sand.u32 1, %s1354_s21  }
 0xa21   : > { %p1741_p7 = scmp.ne.s32.totalorder %s1728_s8, 0  ;;  %s896_s11 = scalar_lea.sflag [#allocation4], %s895_s26 }
 0xa23   : > { %p1138_p8 = pnand %p1145_p4, %p1741_p7 }
 0xa25   : > { %1349 = dma.done.wait (!%p1138_p8), %s896_s11, 256  }
 0xa26   : > { %1351 = vsyncadd (!%p1138_p8), %s896_s11, 4294967040  ;;  %p18_p11 = scmp.ge.s32.totalorder %s1439_s27, 4   ;;  %s1742_s21 = smov %s1358_s22 }
 0xa27   : > { %s1743_s22 = smov %s1362_s23  ;;  %s1744_s23 = smov %s1450_s30 }
 0xa28   : > { %s1745_s24 = smov %s1439_s27  ;;  %20 = sbr.rel (!%p18_p11) target bundleno = 5 (0x5), region = 88 }
 0xa2f   :  { %901 = vsyncpa [#allocation3], 1 }
 0xa30   :  { %903 = vsyncpa [#allocation3 + $0x1], 1 }
 0xa31   :  { %904 = vsyncpa [#allocation6], 1 }
 0xa32   :  { %905 = vsyncpa [#allocation4], 1 }
 0xa33   :  { %907 = vsyncpa [#allocation4 + $0x1], 1 }

</bundles_post_ra>
